<compile_context>
chip_gen: v6e
topology: v6e:2x2x1
jax: 0.10.0
libtpu: 0.0.40
codegen_flags: <defaults>
</compile_context>

<pallas_src>
import jax
import jax.numpy as jnp
from jax import lax
from jax.experimental import pallas as pl
from jax.experimental.pallas import tpu as pltpu


# ----------------------------------------------------------------------------
# Fused kernel (one sample-block per grid step).
#   w1_ref    : (Cfeat, Cin)   SMEM  norm-folded 1x1 conv weight (scalars)
#   b1_ref    : (Cfeat,)       SMEM  norm-folded conv bias (scalars)
#   x_ref     : (Cin, nb, HW)  VMEM  dense per-channel input slabs
#   w2t_ref   : (Cfeat, NCp)   VMEM  FC weight, transposed, lane-padded to 128
#   b2_ref    : (1, NCp)       VMEM  FC bias (pad lanes = -1e30)
#   gch_ref   : (nb, Cfeat)    VMEM  GradCAM channel weights W2[y]/HW (if y)
#   logits_ref: (nb, NCp)      classifier logits (padded slab)
#   cam_ref   : (nb, HW)       min-max normalized class activation maps
# ----------------------------------------------------------------------------
def make_fused_kernel(cin, cfeat, hw, nb, nc_pad, y_provided):
    inv_hw = 1.0 / float(hw)

    def kernel(w1_ref, b1_ref, x_ref, w2t_ref, b2_ref, gch_ref,
               logits_ref, cam_ref):

        def act(f):
            # 1x1 conv (norm folded in) as Cin scalar*slab FMAs on the VPU.
            a = x_ref[0] * w1_ref[f, 0]
            for c in range(1, cin):
                a = a + x_ref[c] * w1_ref[f, c]
            return jnp.maximum(a + b1_ref[f], 0.0)            # (nb, HW)

        logits = jnp.zeros((nb, nc_pad), jnp.float32) + b2_ref[...]
        cam = jnp.zeros((nb, hw), jnp.float32)

        if y_provided:
            gch = gch_ref[...]                                 # (nb, Cfeat)
            for f in range(cfeat):                             # small static unroll
                a_f = act(f)
                pooled_f = jnp.sum(a_f, axis=-1, keepdims=True) * inv_hw
                logits = logits + pooled_f * w2t_ref[pl.ds(f, 1), :]
                cam = cam + gch[:, f:f + 1] * a_f
        else:
            # pass 1: pooled features -> logits
            for f in range(cfeat):
                a_f = act(f)
                pooled_f = jnp.sum(a_f, axis=-1, keepdims=True) * inv_hw
                logits = logits + pooled_f * w2t_ref[pl.ds(f, 1), :]
            # predicted class: first-index argmax (pad lanes hold -1e30 bias)
            mx = jnp.max(logits, axis=-1, keepdims=True)
            idx = lax.broadcasted_iota(jnp.int32, (nb, nc_pad), 1)
            amax = jnp.min(jnp.where(logits >= mx, idx, nc_pad),
                           axis=-1, keepdims=True)
            sel = (idx == amax).astype(jnp.float32)            # one-hot (nb, NCp)
            # pass 2: gradcam channel weights + cam accumulation (cheap recompute)
            for f in range(cfeat):
                gch_f = jnp.sum(sel * w2t_ref[pl.ds(f, 1), :],
                                axis=-1, keepdims=True) * inv_hw
                cam = cam + gch_f * act(f)

        logits_ref[...] = logits                               # dense block store

        cam = jnp.maximum(cam, 0.0)
        cmin = jnp.min(cam, axis=-1, keepdims=True)
        cmax = jnp.max(cam, axis=-1, keepdims=True)
        cam_ref[...] = (cam - cmin) / (cmax - cmin + 1e-8)     # exact divide

    return kernel


def gradcam_explainer_forward(x, y, params):
    """Mirror of GradCamExplainer.forward(inputs, y).

    x: (N, Cin, H, W) float32 (NCHW, like the PyTorch module)
    y: (N,) int32 target classes, or None -> use argmax(logits)
    returns (heatmaps (N, H, W) in [0, 1], logits (N, num_classes))
    """
    mean, std, w1, b1, w2, b2 = params
    n, cin, h, w = x.shape
    hw = h * w
    cfeat = w1.shape[0]
    nc = w2.shape[0]
    nc_pad = ((nc + 127) // 128) * 128                          # lane-dense logits

    # Fold (x - mean)/std into the conv weights (one-off, trace time):
    #   w1 @ ((x - mean)/std) + b1 == (w1/std) @ x + (b1 - w1 @ (mean/std)).
    inv_std = 1.0 / std                                         # (Cin, 1)
    w1f = (w1 * inv_std.reshape(1, cin)).astype(jnp.float32)    # (Cfeat, Cin) SMEM
    b1f = (b1 - w1 @ (mean * inv_std)).reshape(cfeat).astype(jnp.float32)

    w2t = jnp.zeros((cfeat, nc_pad), jnp.float32).at[:, :nc].set(
        w2.T.astype(jnp.float32))                               # (Cfeat, NCp)
    b2p = jnp.full((1, nc_pad), -1e30, jnp.float32).at[0, :nc].set(
        b2.astype(jnp.float32))                                 # pad lanes never argmax

    y_provided = y is not None
    if y_provided:
        # Closed-form grad of logits[n, y[n]] w.r.t. the target activations
        # through the average pool: W2[y, c] / (H*W).
        gch = (w2[y] * (1.0 / float(hw))).astype(jnp.float32)   # (N, Cfeat)
    else:
        gch = jnp.zeros((n, cfeat), jnp.float32)                # unused

    # Dense input layout: (Cin, N, HW) -> blocks (Cin, nb, HW) with dense
    # trailing (sublane, lane) dims.
    x_b = jnp.transpose(x.reshape(n, cin, hw), (1, 0, 2)).astype(jnp.float32)

    # Sample-block size: whole batch when small; otherwise a multiple of 8,
    # capped at 128 and at ~N/2 so the grid keeps >=2 steps for megacore
    # sharding on v7x's two TensorCores.
    if n <= 8:
        nb = n
    else:
        nb = min(128, max(8, (n // 2) // 8 * 8))
    pad = (-n) % nb
    if pad:
        # TODO(synk): padded samples do wasted (but harmless) work; a remainder
        # block would avoid it for very large nb.
        x_b = jnp.pad(x_b, ((0, 0), (0, pad), (0, 0)))
        gch = jnp.pad(gch, ((0, pad), (0, 0)))
    n_tot = n + pad

    # Explicit scoped-VMEM budget (v5e default is 16 MiB); capped well under
    # v7x's 64 MiB physical VMEM.
    block_bytes = 4 * (cin * nb * hw + nb * hw + nb * nc_pad + nb * cfeat)
    vmem_limit = int(min(48 << 20, max(16 << 20, 4 * block_bytes + (4 << 20))))

    logits, cams = pl.pallas_call(
        make_fused_kernel(cin, cfeat, hw, nb, nc_pad, y_provided),
        out_shape=(
            jax.ShapeDtypeStruct((n_tot, nc_pad), jnp.float32),
            jax.ShapeDtypeStruct((n_tot, hw), jnp.float32),
        ),
        grid=(n_tot // nb,),
        in_specs=[
            pl.BlockSpec(memory_space=pltpu.MemorySpace.SMEM),   # w1 (scalars)
            pl.BlockSpec(memory_space=pltpu.MemorySpace.SMEM),   # b1 (scalars)
            pl.BlockSpec((cin, nb, hw), lambda i: (0, i, 0)),    # x  (dense slabs)
            pl.BlockSpec((cfeat, nc_pad), lambda i: (0, 0)),     # w2t (resident)
            pl.BlockSpec((1, nc_pad), lambda i: (0, 0)),         # b2  (resident)
            pl.BlockSpec((nb, cfeat), lambda i: (i, 0)),         # gch (dense 2-D)
        ],
        out_specs=(
            pl.BlockSpec((nb, nc_pad), lambda i: (i, 0)),        # logits slab
            pl.BlockSpec((nb, hw), lambda i: (i, 0)),            # cam slab
        ),
        compiler_params=pltpu.CompilerParams(
            dimension_semantics=("parallel",),
            vmem_limit_bytes=vmem_limit),
    )(w1f, b1f, x_b, w2t, b2p, gch)

    heatmaps = cams[:n].reshape(n, h, w)
    logits = logits[:n, :nc]
    # TODO(synk): cfg.GRADCAM.COLORMAP overlay (cv2 colormap + image blend) has
    # no clean Pallas equivalent; the normalized heatmap is returned instead.
    return heatmaps, logits


def make_params(cin, cfeat, num_classes):
    """Deterministic synthetic parameters (shapes implied by the module)."""
    k = jax.random.PRNGKey(0)
    k1, k2, k3, k4 = jax.random.split(k, 4)
    mean = jnp.linspace(0.4, 0.5, cin, dtype=jnp.float32).reshape(cin, 1)
    std = jnp.full((cin, 1), 0.25, dtype=jnp.float32)
    w1 = jax.random.normal(k1, (cfeat, cin), jnp.float32) * 0.5
    b1 = jax.random.normal(k2, (cfeat, 1), jnp.float32) * 0.1
    w2 = jax.random.normal(k3, (num_classes, cfeat), jnp.float32) * 0.5
    b2 = jax.random.normal(k4, (num_classes,), jnp.float32) * 0.1
    return mean, std, w1, b1, w2, b2


def _reference(x, y, params):
    """Pure-JAX reference of the same forward pass (tolerance check)."""
    mean, std, w1, b1, w2, b2 = params
    n, cin, h, w = x.shape
    hw = h * w
    xf = x.reshape(n, cin, hw).astype(jnp.float32)
    xn = (xf - mean[None]) / std[None]
    a = jnp.maximum(jnp.einsum('fc,nch->nfh', w1, xn) + b1[None], 0.0)
    pooled = a.mean(-1)
    logits = pooled @ w2.T + b2
    yy = jnp.argmax(logits, axis=-1) if y is None else y
    gch = w2[yy] / float(hw)
    cam = jnp.maximum(jnp.einsum('nf,nfh->nh', gch, a), 0.0)
    cmin = cam.min(-1, keepdims=True)
    cmax = cam.max(-1, keepdims=True)
    heat = (cam - cmin) / (cmax - cmin + 1e-8)
    return heat.reshape(n, h, w), logits


if __name__ == "__main__":
    N, CIN, H, W = 2, 4, 16, 16
    CFEAT, NUM_CLASSES = 8, 10

    key = jax.random.PRNGKey(0)
    xk, _ = jax.random.split(key)
    x = jax.random.uniform(xk, (N, CIN, H, W), jnp.float32)
    y = jnp.array([1, 3], dtype=jnp.int32)

    params = make_params(CIN, CFEAT, NUM_CLASSES)

    # --- path 1: explicit target classes -----------------------------------
    heatmaps, logits = gradcam_explainer_forward(x, y, params)
    heatmaps = jax.block_until_ready(heatmaps)
    logits = jax.block_until_ready(logits)

    assert heatmaps.shape == (N, H, W)
    assert logits.shape == (N, NUM_CLASSES)
    assert bool(jnp.all(jnp.isfinite(heatmaps)))
    assert bool(jnp.all(jnp.isfinite(logits)))
    assert float(jnp.min(heatmaps)) >= 0.0
    assert float(jnp.max(heatmaps)) <= 1.0 + 1e-6

    ref_heat, ref_logits = _reference(x, y, params)
    assert bool(jnp.allclose(logits, ref_logits, atol=1e-4, rtol=1e-4))
    assert bool(jnp.allclose(heatmaps, ref_heat, atol=1e-4, rtol=1e-4))

    # --- path 2: y=None -> predicted-class GradCAM (in-kernel argmax) -------
    heat2, logits2 = gradcam_explainer_forward(x, None, params)
    heat2 = jax.block_until_ready(heat2)
    ref_heat2, ref_logits2 = _reference(x, None, params)
    assert bool(jnp.allclose(logits2, ref_logits2, atol=1e-4, rtol=1e-4))
    assert bool(jnp.allclose(heat2, ref_heat2, atol=1e-4, rtol=1e-4))

    print("KERNEL_OK")
</pallas_src>

<mosaic_0001>
module attributes {stable_mosaic.version = 11 : i64} {
  func.func @kernel(%arg0: i32, %arg1: memref<8x4xf32, #tpu.memory_space<smem>>, %arg2: memref<8xf32, #tpu.memory_space<smem>>, %arg3: memref<4x2x256xf32, #tpu.memory_space<vmem>>, %arg4: memref<8x128xf32, #tpu.memory_space<vmem>>, %arg5: memref<1x128xf32, #tpu.memory_space<vmem>>, %arg6: memref<2x8xf32, #tpu.memory_space<vmem>>, %arg7: memref<2x128xf32, #tpu.memory_space<vmem>>, %arg8: memref<2x256xf32, #tpu.memory_space<vmem>>) attributes {dimension_semantics = [#tpu.dimension_semantics<parallel>], iteration_bounds = array<i64: 1>, scalar_prefetch = 0 : i64, scratch_operands = 0 : i64, tpu.core_type = #tpu.core_type<tc>, window_params = [{transform_indices = @transform_0, window_bounds = array<i64: 8, 4>}, {transform_indices = @transform_1, window_bounds = array<i64: 8>}, {transform_indices = @transform_2, window_bounds = array<i64: 4, 2, 256>}, {pipeline_mode = #tpu.pipeline_mode<synchronous>, transform_indices = @transform_3, window_bounds = array<i64: 8, 128>}, {pipeline_mode = #tpu.pipeline_mode<synchronous>, transform_indices = @transform_4, window_bounds = array<i64: 1, 128>}, {transform_indices = @transform_5, window_bounds = array<i64: 2, 8>}, {transform_indices = @transform_6, window_bounds = array<i64: 2, 128>}, {transform_indices = @transform_7, window_bounds = array<i64: 2, 256>}]} {
    %cst = arith.constant 0.000000e+00 : f32
    %0 = vector.broadcast %cst : f32 to vector<2x128xf32>
    %c0 = arith.constant 0 : index
    %c0_0 = arith.constant 0 : index
    %1 = vector.load %arg5[%c0, %c0_0] : memref<1x128xf32, #tpu.memory_space<vmem>>, vector<1x128xf32>
    %2 = vector.broadcast %1 : vector<1x128xf32> to vector<2x128xf32>
    %3 = arith.addf %0, %2 : vector<2x128xf32>
    %cst_1 = arith.constant 0.000000e+00 : f32
    %4 = vector.broadcast %cst_1 : f32 to vector<2x256xf32>
    %c0_2 = arith.constant 0 : index
    %c0_3 = arith.constant 0 : index
    %5 = vector.load %arg6[%c0_2, %c0_3] : memref<2x8xf32, #tpu.memory_space<vmem>>, vector<2x8xf32>
    %c0_4 = arith.constant 0 : index
    %c0_5 = arith.constant 0 : index
    %c0_6 = arith.constant 0 : index
    %6 = vector.load %arg3[%c0_4, %c0_5, %c0_6] : memref<4x2x256xf32, #tpu.memory_space<vmem>>, vector<1x2x256xf32>
    %7 = vector.shape_cast %6 : vector<1x2x256xf32> to vector<2x256xf32>
    %c0_7 = arith.constant 0 : index
    %c0_8 = arith.constant 0 : index
    %8 = memref.load %arg1[%c0_7, %c0_8] : memref<8x4xf32, #tpu.memory_space<smem>>
    %9 = vector.broadcast %8 : f32 to vector<2x256xf32>
    %10 = arith.mulf %7, %9 : vector<2x256xf32>
    %c1 = arith.constant 1 : index
    %c0_9 = arith.constant 0 : index
    %c0_10 = arith.constant 0 : index
    %11 = vector.load %arg3[%c1, %c0_9, %c0_10] : memref<4x2x256xf32, #tpu.memory_space<vmem>>, vector<1x2x256xf32>
    %12 = vector.shape_cast %11 : vector<1x2x256xf32> to vector<2x256xf32>
    %c0_11 = arith.constant 0 : index
    %c1_12 = arith.constant 1 : index
    %13 = memref.load %arg1[%c0_11, %c1_12] : memref<8x4xf32, #tpu.memory_space<smem>>
    %14 = vector.broadcast %13 : f32 to vector<2x256xf32>
    %15 = arith.mulf %12, %14 : vector<2x256xf32>
    %16 = arith.addf %10, %15 : vector<2x256xf32>
    %c2 = arith.constant 2 : index
    %c0_13 = arith.constant 0 : index
    %c0_14 = arith.constant 0 : index
    %17 = vector.load %arg3[%c2, %c0_13, %c0_14] : memref<4x2x256xf32, #tpu.memory_space<vmem>>, vector<1x2x256xf32>
    %18 = vector.shape_cast %17 : vector<1x2x256xf32> to vector<2x256xf32>
    %c0_15 = arith.constant 0 : index
    %c2_16 = arith.constant 2 : index
    %19 = memref.load %arg1[%c0_15, %c2_16] : memref<8x4xf32, #tpu.memory_space<smem>>
    %20 = vector.broadcast %19 : f32 to vector<2x256xf32>
    %21 = arith.mulf %18, %20 : vector<2x256xf32>
    %22 = arith.addf %16, %21 : vector<2x256xf32>
    %c3 = arith.constant 3 : index
    %c0_17 = arith.constant 0 : index
    %c0_18 = arith.constant 0 : index
    %23 = vector.load %arg3[%c3, %c0_17, %c0_18] : memref<4x2x256xf32, #tpu.memory_space<vmem>>, vector<1x2x256xf32>
    %24 = vector.shape_cast %23 : vector<1x2x256xf32> to vector<2x256xf32>
    %c0_19 = arith.constant 0 : index
    %c3_20 = arith.constant 3 : index
    %25 = memref.load %arg1[%c0_19, %c3_20] : memref<8x4xf32, #tpu.memory_space<smem>>
    %26 = vector.broadcast %25 : f32 to vector<2x256xf32>
    %27 = arith.mulf %24, %26 : vector<2x256xf32>
    %28 = arith.addf %22, %27 : vector<2x256xf32>
    %c0_21 = arith.constant 0 : index
    %29 = memref.load %arg2[%c0_21] : memref<8xf32, #tpu.memory_space<smem>>
    %30 = vector.broadcast %29 : f32 to vector<2x256xf32>
    %31 = arith.addf %28, %30 : vector<2x256xf32>
    %cst_22 = arith.constant 0.000000e+00 : f32
    %32 = vector.broadcast %cst_22 : f32 to vector<2x256xf32>
    %33 = arith.maximumf %31, %32 : vector<2x256xf32>
    %cst_23 = arith.constant dense<0.000000e+00> : vector<2xf32>
    %34 = vector.multi_reduction <add>, %33, %cst_23 [1] : vector<2x256xf32> to vector<2xf32>
    %35 = vector.shape_cast %34 : vector<2xf32> to vector<2x1xf32>
    %cst_24 = arith.constant 3.906250e-03 : f32
    %36 = vector.broadcast %cst_24 : f32 to vector<2x1xf32>
    %37 = arith.mulf %35, %36 : vector<2x1xf32>
    %c0_25 = arith.constant 0 : index
    %c0_26 = arith.constant 0 : index
    %38 = vector.load %arg4[%c0_25, %c0_26] : memref<8x128xf32, #tpu.memory_space<vmem>>, vector<1x128xf32>
    %39 = vector.broadcast %37 : vector<2x1xf32> to vector<2x128xf32>
    %40 = vector.broadcast %38 : vector<1x128xf32> to vector<2x128xf32>
    %41 = arith.mulf %39, %40 : vector<2x128xf32>
    %42 = arith.addf %3, %41 : vector<2x128xf32>
    %43 = vector.extract_strided_slice %5 {offsets = [0, 0], sizes = [2, 1], strides = [1, 1]} : vector<2x8xf32> to vector<2x1xf32>
    %44 = vector.broadcast %43 : vector<2x1xf32> to vector<2x256xf32>
    %45 = arith.mulf %44, %33 : vector<2x256xf32>
    %46 = arith.addf %4, %45 : vector<2x256xf32>
    %c0_27 = arith.constant 0 : index
    %c0_28 = arith.constant 0 : index
    %c0_29 = arith.constant 0 : index
    %47 = vector.load %arg3[%c0_27, %c0_28, %c0_29] : memref<4x2x256xf32, #tpu.memory_space<vmem>>, vector<1x2x256xf32>
    %48 = vector.shape_cast %47 : vector<1x2x256xf32> to vector<2x256xf32>
    %c1_30 = arith.constant 1 : index
    %c0_31 = arith.constant 0 : index
    %49 = memref.load %arg1[%c1_30, %c0_31] : memref<8x4xf32, #tpu.memory_space<smem>>
    %50 = vector.broadcast %49 : f32 to vector<2x256xf32>
    %51 = arith.mulf %48, %50 : vector<2x256xf32>
    %c1_32 = arith.constant 1 : index
    %c0_33 = arith.constant 0 : index
    %c0_34 = arith.constant 0 : index
    %52 = vector.load %arg3[%c1_32, %c0_33, %c0_34] : memref<4x2x256xf32, #tpu.memory_space<vmem>>, vector<1x2x256xf32>
    %53 = vector.shape_cast %52 : vector<1x2x256xf32> to vector<2x256xf32>
    %c1_35 = arith.constant 1 : index
    %c1_36 = arith.constant 1 : index
    %54 = memref.load %arg1[%c1_35, %c1_36] : memref<8x4xf32, #tpu.memory_space<smem>>
    %55 = vector.broadcast %54 : f32 to vector<2x256xf32>
    %56 = arith.mulf %53, %55 : vector<2x256xf32>
    %57 = arith.addf %51, %56 : vector<2x256xf32>
    %c2_37 = arith.constant 2 : index
    %c0_38 = arith.constant 0 : index
    %c0_39 = arith.constant 0 : index
    %58 = vector.load %arg3[%c2_37, %c0_38, %c0_39] : memref<4x2x256xf32, #tpu.memory_space<vmem>>, vector<1x2x256xf32>
    %59 = vector.shape_cast %58 : vector<1x2x256xf32> to vector<2x256xf32>
    %c1_40 = arith.constant 1 : index
    %c2_41 = arith.constant 2 : index
    %60 = memref.load %arg1[%c1_40, %c2_41] : memref<8x4xf32, #tpu.memory_space<smem>>
    %61 = vector.broadcast %60 : f32 to vector<2x256xf32>
    %62 = arith.mulf %59, %61 : vector<2x256xf32>
    %63 = arith.addf %57, %62 : vector<2x256xf32>
    %c3_42 = arith.constant 3 : index
    %c0_43 = arith.constant 0 : index
    %c0_44 = arith.constant 0 : index
    %64 = vector.load %arg3[%c3_42, %c0_43, %c0_44] : memref<4x2x256xf32, #tpu.memory_space<vmem>>, vector<1x2x256xf32>
    %65 = vector.shape_cast %64 : vector<1x2x256xf32> to vector<2x256xf32>
    %c1_45 = arith.constant 1 : index
    %c3_46 = arith.constant 3 : index
    %66 = memref.load %arg1[%c1_45, %c3_46] : memref<8x4xf32, #tpu.memory_space<smem>>
    %67 = vector.broadcast %66 : f32 to vector<2x256xf32>
    %68 = arith.mulf %65, %67 : vector<2x256xf32>
    %69 = arith.addf %63, %68 : vector<2x256xf32>
    %c1_47 = arith.constant 1 : index
    %70 = memref.load %arg2[%c1_47] : memref<8xf32, #tpu.memory_space<smem>>
    %71 = vector.broadcast %70 : f32 to vector<2x256xf32>
    %72 = arith.addf %69, %71 : vector<2x256xf32>
    %cst_48 = arith.constant 0.000000e+00 : f32
    %73 = vector.broadcast %cst_48 : f32 to vector<2x256xf32>
    %74 = arith.maximumf %72, %73 : vector<2x256xf32>
    %cst_49 = arith.constant dense<0.000000e+00> : vector<2xf32>
    %75 = vector.multi_reduction <add>, %74, %cst_49 [1] : vector<2x256xf32> to vector<2xf32>
    %76 = vector.shape_cast %75 : vector<2xf32> to vector<2x1xf32>
    %cst_50 = arith.constant 3.906250e-03 : f32
    %77 = vector.broadcast %cst_50 : f32 to vector<2x1xf32>
    %78 = arith.mulf %76, %77 : vector<2x1xf32>
    %c1_51 = arith.constant 1 : index
    %c0_52 = arith.constant 0 : index
    %79 = vector.load %arg4[%c1_51, %c0_52] : memref<8x128xf32, #tpu.memory_space<vmem>>, vector<1x128xf32>
    %80 = vector.broadcast %78 : vector<2x1xf32> to vector<2x128xf32>
    %81 = vector.broadcast %79 : vector<1x128xf32> to vector<2x128xf32>
    %82 = arith.mulf %80, %81 : vector<2x128xf32>
    %83 = arith.addf %42, %82 : vector<2x128xf32>
    %84 = vector.extract_strided_slice %5 {offsets = [0, 1], sizes = [2, 1], strides = [1, 1]} : vector<2x8xf32> to vector<2x1xf32>
    %85 = vector.broadcast %84 : vector<2x1xf32> to vector<2x256xf32>
    %86 = arith.mulf %85, %74 : vector<2x256xf32>
    %87 = arith.addf %46, %86 : vector<2x256xf32>
    %c0_53 = arith.constant 0 : index
    %c0_54 = arith.constant 0 : index
    %c0_55 = arith.constant 0 : index
    %88 = vector.load %arg3[%c0_53, %c0_54, %c0_55] : memref<4x2x256xf32, #tpu.memory_space<vmem>>, vector<1x2x256xf32>
    %89 = vector.shape_cast %88 : vector<1x2x256xf32> to vector<2x256xf32>
    %c2_56 = arith.constant 2 : index
    %c0_57 = arith.constant 0 : index
    %90 = memref.load %arg1[%c2_56, %c0_57] : memref<8x4xf32, #tpu.memory_space<smem>>
    %91 = vector.broadcast %90 : f32 to vector<2x256xf32>
    %92 = arith.mulf %89, %91 : vector<2x256xf32>
    %c1_58 = arith.constant 1 : index
    %c0_59 = arith.constant 0 : index
    %c0_60 = arith.constant 0 : index
    %93 = vector.load %arg3[%c1_58, %c0_59, %c0_60] : memref<4x2x256xf32, #tpu.memory_space<vmem>>, vector<1x2x256xf32>
    %94 = vector.shape_cast %93 : vector<1x2x256xf32> to vector<2x256xf32>
    %c2_61 = arith.constant 2 : index
    %c1_62 = arith.constant 1 : index
    %95 = memref.load %arg1[%c2_61, %c1_62] : memref<8x4xf32, #tpu.memory_space<smem>>
    %96 = vector.broadcast %95 : f32 to vector<2x256xf32>
    %97 = arith.mulf %94, %96 : vector<2x256xf32>
    %98 = arith.addf %92, %97 : vector<2x256xf32>
    %c2_63 = arith.constant 2 : index
    %c0_64 = arith.constant 0 : index
    %c0_65 = arith.constant 0 : index
    %99 = vector.load %arg3[%c2_63, %c0_64, %c0_65] : memref<4x2x256xf32, #tpu.memory_space<vmem>>, vector<1x2x256xf32>
    %100 = vector.shape_cast %99 : vector<1x2x256xf32> to vector<2x256xf32>
    %c2_66 = arith.constant 2 : index
    %c2_67 = arith.constant 2 : index
    %101 = memref.load %arg1[%c2_66, %c2_67] : memref<8x4xf32, #tpu.memory_space<smem>>
    %102 = vector.broadcast %101 : f32 to vector<2x256xf32>
    %103 = arith.mulf %100, %102 : vector<2x256xf32>
    %104 = arith.addf %98, %103 : vector<2x256xf32>
    %c3_68 = arith.constant 3 : index
    %c0_69 = arith.constant 0 : index
    %c0_70 = arith.constant 0 : index
    %105 = vector.load %arg3[%c3_68, %c0_69, %c0_70] : memref<4x2x256xf32, #tpu.memory_space<vmem>>, vector<1x2x256xf32>
    %106 = vector.shape_cast %105 : vector<1x2x256xf32> to vector<2x256xf32>
    %c2_71 = arith.constant 2 : index
    %c3_72 = arith.constant 3 : index
    %107 = memref.load %arg1[%c2_71, %c3_72] : memref<8x4xf32, #tpu.memory_space<smem>>
    %108 = vector.broadcast %107 : f32 to vector<2x256xf32>
    %109 = arith.mulf %106, %108 : vector<2x256xf32>
    %110 = arith.addf %104, %109 : vector<2x256xf32>
    %c2_73 = arith.constant 2 : index
    %111 = memref.load %arg2[%c2_73] : memref<8xf32, #tpu.memory_space<smem>>
    %112 = vector.broadcast %111 : f32 to vector<2x256xf32>
    %113 = arith.addf %110, %112 : vector<2x256xf32>
    %cst_74 = arith.constant 0.000000e+00 : f32
    %114 = vector.broadcast %cst_74 : f32 to vector<2x256xf32>
    %115 = arith.maximumf %113, %114 : vector<2x256xf32>
    %cst_75 = arith.constant dense<0.000000e+00> : vector<2xf32>
    %116 = vector.multi_reduction <add>, %115, %cst_75 [1] : vector<2x256xf32> to vector<2xf32>
    %117 = vector.shape_cast %116 : vector<2xf32> to vector<2x1xf32>
    %cst_76 = arith.constant 3.906250e-03 : f32
    %118 = vector.broadcast %cst_76 : f32 to vector<2x1xf32>
    %119 = arith.mulf %117, %118 : vector<2x1xf32>
    %c2_77 = arith.constant 2 : index
    %c0_78 = arith.constant 0 : index
    %120 = vector.load %arg4[%c2_77, %c0_78] : memref<8x128xf32, #tpu.memory_space<vmem>>, vector<1x128xf32>
    %121 = vector.broadcast %119 : vector<2x1xf32> to vector<2x128xf32>
    %122 = vector.broadcast %120 : vector<1x128xf32> to vector<2x128xf32>
    %123 = arith.mulf %121, %122 : vector<2x128xf32>
    %124 = arith.addf %83, %123 : vector<2x128xf32>
    %125 = vector.extract_strided_slice %5 {offsets = [0, 2], sizes = [2, 1], strides = [1, 1]} : vector<2x8xf32> to vector<2x1xf32>
    %126 = vector.broadcast %125 : vector<2x1xf32> to vector<2x256xf32>
    %127 = arith.mulf %126, %115 : vector<2x256xf32>
    %128 = arith.addf %87, %127 : vector<2x256xf32>
    %c0_79 = arith.constant 0 : index
    %c0_80 = arith.constant 0 : index
    %c0_81 = arith.constant 0 : index
    %129 = vector.load %arg3[%c0_79, %c0_80, %c0_81] : memref<4x2x256xf32, #tpu.memory_space<vmem>>, vector<1x2x256xf32>
    %130 = vector.shape_cast %129 : vector<1x2x256xf32> to vector<2x256xf32>
    %c3_82 = arith.constant 3 : index
    %c0_83 = arith.constant 0 : index
    %131 = memref.load %arg1[%c3_82, %c0_83] : memref<8x4xf32, #tpu.memory_space<smem>>
    %132 = vector.broadcast %131 : f32 to vector<2x256xf32>
    %133 = arith.mulf %130, %132 : vector<2x256xf32>
    %c1_84 = arith.constant 1 : index
    %c0_85 = arith.constant 0 : index
    %c0_86 = arith.constant 0 : index
    %134 = vector.load %arg3[%c1_84, %c0_85, %c0_86] : memref<4x2x256xf32, #tpu.memory_space<vmem>>, vector<1x2x256xf32>
    %135 = vector.shape_cast %134 : vector<1x2x256xf32> to vector<2x256xf32>
    %c3_87 = arith.constant 3 : index
    %c1_88 = arith.constant 1 : index
    %136 = memref.load %arg1[%c3_87, %c1_88] : memref<8x4xf32, #tpu.memory_space<smem>>
    %137 = vector.broadcast %136 : f32 to vector<2x256xf32>
    %138 = arith.mulf %135, %137 : vector<2x256xf32>
    %139 = arith.addf %133, %138 : vector<2x256xf32>
    %c2_89 = arith.constant 2 : index
    %c0_90 = arith.constant 0 : index
    %c0_91 = arith.constant 0 : index
    %140 = vector.load %arg3[%c2_89, %c0_90, %c0_91] : memref<4x2x256xf32, #tpu.memory_space<vmem>>, vector<1x2x256xf32>
    %141 = vector.shape_cast %140 : vector<1x2x256xf32> to vector<2x256xf32>
    %c3_92 = arith.constant 3 : index
    %c2_93 = arith.constant 2 : index
    %142 = memref.load %arg1[%c3_92, %c2_93] : memref<8x4xf32, #tpu.memory_space<smem>>
    %143 = vector.broadcast %142 : f32 to vector<2x256xf32>
    %144 = arith.mulf %141, %143 : vector<2x256xf32>
    %145 = arith.addf %139, %144 : vector<2x256xf32>
    %c3_94 = arith.constant 3 : index
    %c0_95 = arith.constant 0 : index
    %c0_96 = arith.constant 0 : index
    %146 = vector.load %arg3[%c3_94, %c0_95, %c0_96] : memref<4x2x256xf32, #tpu.memory_space<vmem>>, vector<1x2x256xf32>
    %147 = vector.shape_cast %146 : vector<1x2x256xf32> to vector<2x256xf32>
    %c3_97 = arith.constant 3 : index
    %c3_98 = arith.constant 3 : index
    %148 = memref.load %arg1[%c3_97, %c3_98] : memref<8x4xf32, #tpu.memory_space<smem>>
    %149 = vector.broadcast %148 : f32 to vector<2x256xf32>
    %150 = arith.mulf %147, %149 : vector<2x256xf32>
    %151 = arith.addf %145, %150 : vector<2x256xf32>
    %c3_99 = arith.constant 3 : index
    %152 = memref.load %arg2[%c3_99] : memref<8xf32, #tpu.memory_space<smem>>
    %153 = vector.broadcast %152 : f32 to vector<2x256xf32>
    %154 = arith.addf %151, %153 : vector<2x256xf32>
    %cst_100 = arith.constant 0.000000e+00 : f32
    %155 = vector.broadcast %cst_100 : f32 to vector<2x256xf32>
    %156 = arith.maximumf %154, %155 : vector<2x256xf32>
    %cst_101 = arith.constant dense<0.000000e+00> : vector<2xf32>
    %157 = vector.multi_reduction <add>, %156, %cst_101 [1] : vector<2x256xf32> to vector<2xf32>
    %158 = vector.shape_cast %157 : vector<2xf32> to vector<2x1xf32>
    %cst_102 = arith.constant 3.906250e-03 : f32
    %159 = vector.broadcast %cst_102 : f32 to vector<2x1xf32>
    %160 = arith.mulf %158, %159 : vector<2x1xf32>
    %c3_103 = arith.constant 3 : index
    %c0_104 = arith.constant 0 : index
    %161 = vector.load %arg4[%c3_103, %c0_104] : memref<8x128xf32, #tpu.memory_space<vmem>>, vector<1x128xf32>
    %162 = vector.broadcast %160 : vector<2x1xf32> to vector<2x128xf32>
    %163 = vector.broadcast %161 : vector<1x128xf32> to vector<2x128xf32>
    %164 = arith.mulf %162, %163 : vector<2x128xf32>
    %165 = arith.addf %124, %164 : vector<2x128xf32>
    %166 = vector.extract_strided_slice %5 {offsets = [0, 3], sizes = [2, 1], strides = [1, 1]} : vector<2x8xf32> to vector<2x1xf32>
    %167 = vector.broadcast %166 : vector<2x1xf32> to vector<2x256xf32>
    %168 = arith.mulf %167, %156 : vector<2x256xf32>
    %169 = arith.addf %128, %168 : vector<2x256xf32>
    %c0_105 = arith.constant 0 : index
    %c0_106 = arith.constant 0 : index
    %c0_107 = arith.constant 0 : index
    %170 = vector.load %arg3[%c0_105, %c0_106, %c0_107] : memref<4x2x256xf32, #tpu.memory_space<vmem>>, vector<1x2x256xf32>
    %171 = vector.shape_cast %170 : vector<1x2x256xf32> to vector<2x256xf32>
    %c4 = arith.constant 4 : index
    %c0_108 = arith.constant 0 : index
    %172 = memref.load %arg1[%c4, %c0_108] : memref<8x4xf32, #tpu.memory_space<smem>>
    %173 = vector.broadcast %172 : f32 to vector<2x256xf32>
    %174 = arith.mulf %171, %173 : vector<2x256xf32>
    %c1_109 = arith.constant 1 : index
    %c0_110 = arith.constant 0 : index
    %c0_111 = arith.constant 0 : index
    %175 = vector.load %arg3[%c1_109, %c0_110, %c0_111] : memref<4x2x256xf32, #tpu.memory_space<vmem>>, vector<1x2x256xf32>
    %176 = vector.shape_cast %175 : vector<1x2x256xf32> to vector<2x256xf32>
    %c4_112 = arith.constant 4 : index
    %c1_113 = arith.constant 1 : index
    %177 = memref.load %arg1[%c4_112, %c1_113] : memref<8x4xf32, #tpu.memory_space<smem>>
    %178 = vector.broadcast %177 : f32 to vector<2x256xf32>
    %179 = arith.mulf %176, %178 : vector<2x256xf32>
    %180 = arith.addf %174, %179 : vector<2x256xf32>
    %c2_114 = arith.constant 2 : index
    %c0_115 = arith.constant 0 : index
    %c0_116 = arith.constant 0 : index
    %181 = vector.load %arg3[%c2_114, %c0_115, %c0_116] : memref<4x2x256xf32, #tpu.memory_space<vmem>>, vector<1x2x256xf32>
    %182 = vector.shape_cast %181 : vector<1x2x256xf32> to vector<2x256xf32>
    %c4_117 = arith.constant 4 : index
    %c2_118 = arith.constant 2 : index
    %183 = memref.load %arg1[%c4_117, %c2_118] : memref<8x4xf32, #tpu.memory_space<smem>>
    %184 = vector.broadcast %183 : f32 to vector<2x256xf32>
    %185 = arith.mulf %182, %184 : vector<2x256xf32>
    %186 = arith.addf %180, %185 : vector<2x256xf32>
    %c3_119 = arith.constant 3 : index
    %c0_120 = arith.constant 0 : index
    %c0_121 = arith.constant 0 : index
    %187 = vector.load %arg3[%c3_119, %c0_120, %c0_121] : memref<4x2x256xf32, #tpu.memory_space<vmem>>, vector<1x2x256xf32>
    %188 = vector.shape_cast %187 : vector<1x2x256xf32> to vector<2x256xf32>
    %c4_122 = arith.constant 4 : index
    %c3_123 = arith.constant 3 : index
    %189 = memref.load %arg1[%c4_122, %c3_123] : memref<8x4xf32, #tpu.memory_space<smem>>
    %190 = vector.broadcast %189 : f32 to vector<2x256xf32>
    %191 = arith.mulf %188, %190 : vector<2x256xf32>
    %192 = arith.addf %186, %191 : vector<2x256xf32>
    %c4_124 = arith.constant 4 : index
    %193 = memref.load %arg2[%c4_124] : memref<8xf32, #tpu.memory_space<smem>>
    %194 = vector.broadcast %193 : f32 to vector<2x256xf32>
    %195 = arith.addf %192, %194 : vector<2x256xf32>
    %cst_125 = arith.constant 0.000000e+00 : f32
    %196 = vector.broadcast %cst_125 : f32 to vector<2x256xf32>
    %197 = arith.maximumf %195, %196 : vector<2x256xf32>
    %cst_126 = arith.constant dense<0.000000e+00> : vector<2xf32>
    %198 = vector.multi_reduction <add>, %197, %cst_126 [1] : vector<2x256xf32> to vector<2xf32>
    %199 = vector.shape_cast %198 : vector<2xf32> to vector<2x1xf32>
    %cst_127 = arith.constant 3.906250e-03 : f32
    %200 = vector.broadcast %cst_127 : f32 to vector<2x1xf32>
    %201 = arith.mulf %199, %200 : vector<2x1xf32>
    %c4_128 = arith.constant 4 : index
    %c0_129 = arith.constant 0 : index
    %202 = vector.load %arg4[%c4_128, %c0_129] : memref<8x128xf32, #tpu.memory_space<vmem>>, vector<1x128xf32>
    %203 = vector.broadcast %201 : vector<2x1xf32> to vector<2x128xf32>
    %204 = vector.broadcast %202 : vector<1x128xf32> to vector<2x128xf32>
    %205 = arith.mulf %203, %204 : vector<2x128xf32>
    %206 = arith.addf %165, %205 : vector<2x128xf32>
    %207 = vector.extract_strided_slice %5 {offsets = [0, 4], sizes = [2, 1], strides = [1, 1]} : vector<2x8xf32> to vector<2x1xf32>
    %208 = vector.broadcast %207 : vector<2x1xf32> to vector<2x256xf32>
    %209 = arith.mulf %208, %197 : vector<2x256xf32>
    %210 = arith.addf %169, %209 : vector<2x256xf32>
    %c0_130 = arith.constant 0 : index
    %c0_131 = arith.constant 0 : index
    %c0_132 = arith.constant 0 : index
    %211 = vector.load %arg3[%c0_130, %c0_131, %c0_132] : memref<4x2x256xf32, #tpu.memory_space<vmem>>, vector<1x2x256xf32>
    %212 = vector.shape_cast %211 : vector<1x2x256xf32> to vector<2x256xf32>
    %c5 = arith.constant 5 : index
    %c0_133 = arith.constant 0 : index
    %213 = memref.load %arg1[%c5, %c0_133] : memref<8x4xf32, #tpu.memory_space<smem>>
    %214 = vector.broadcast %213 : f32 to vector<2x256xf32>
    %215 = arith.mulf %212, %214 : vector<2x256xf32>
    %c1_134 = arith.constant 1 : index
    %c0_135 = arith.constant 0 : index
    %c0_136 = arith.constant 0 : index
    %216 = vector.load %arg3[%c1_134, %c0_135, %c0_136] : memref<4x2x256xf32, #tpu.memory_space<vmem>>, vector<1x2x256xf32>
    %217 = vector.shape_cast %216 : vector<1x2x256xf32> to vector<2x256xf32>
    %c5_137 = arith.constant 5 : index
    %c1_138 = arith.constant 1 : index
    %218 = memref.load %arg1[%c5_137, %c1_138] : memref<8x4xf32, #tpu.memory_space<smem>>
    %219 = vector.broadcast %218 : f32 to vector<2x256xf32>
    %220 = arith.mulf %217, %219 : vector<2x256xf32>
    %221 = arith.addf %215, %220 : vector<2x256xf32>
    %c2_139 = arith.constant 2 : index
    %c0_140 = arith.constant 0 : index
    %c0_141 = arith.constant 0 : index
    %222 = vector.load %arg3[%c2_139, %c0_140, %c0_141] : memref<4x2x256xf32, #tpu.memory_space<vmem>>, vector<1x2x256xf32>
    %223 = vector.shape_cast %222 : vector<1x2x256xf32> to vector<2x256xf32>
    %c5_142 = arith.constant 5 : index
    %c2_143 = arith.constant 2 : index
    %224 = memref.load %arg1[%c5_142, %c2_143] : memref<8x4xf32, #tpu.memory_space<smem>>
    %225 = vector.broadcast %224 : f32 to vector<2x256xf32>
    %226 = arith.mulf %223, %225 : vector<2x256xf32>
    %227 = arith.addf %221, %226 : vector<2x256xf32>
    %c3_144 = arith.constant 3 : index
    %c0_145 = arith.constant 0 : index
    %c0_146 = arith.constant 0 : index
    %228 = vector.load %arg3[%c3_144, %c0_145, %c0_146] : memref<4x2x256xf32, #tpu.memory_space<vmem>>, vector<1x2x256xf32>
    %229 = vector.shape_cast %228 : vector<1x2x256xf32> to vector<2x256xf32>
    %c5_147 = arith.constant 5 : index
    %c3_148 = arith.constant 3 : index
    %230 = memref.load %arg1[%c5_147, %c3_148] : memref<8x4xf32, #tpu.memory_space<smem>>
    %231 = vector.broadcast %230 : f32 to vector<2x256xf32>
    %232 = arith.mulf %229, %231 : vector<2x256xf32>
    %233 = arith.addf %227, %232 : vector<2x256xf32>
    %c5_149 = arith.constant 5 : index
    %234 = memref.load %arg2[%c5_149] : memref<8xf32, #tpu.memory_space<smem>>
    %235 = vector.broadcast %234 : f32 to vector<2x256xf32>
    %236 = arith.addf %233, %235 : vector<2x256xf32>
    %cst_150 = arith.constant 0.000000e+00 : f32
    %237 = vector.broadcast %cst_150 : f32 to vector<2x256xf32>
    %238 = arith.maximumf %236, %237 : vector<2x256xf32>
    %cst_151 = arith.constant dense<0.000000e+00> : vector<2xf32>
    %239 = vector.multi_reduction <add>, %238, %cst_151 [1] : vector<2x256xf32> to vector<2xf32>
    %240 = vector.shape_cast %239 : vector<2xf32> to vector<2x1xf32>
    %cst_152 = arith.constant 3.906250e-03 : f32
    %241 = vector.broadcast %cst_152 : f32 to vector<2x1xf32>
    %242 = arith.mulf %240, %241 : vector<2x1xf32>
    %c5_153 = arith.constant 5 : index
    %c0_154 = arith.constant 0 : index
    %243 = vector.load %arg4[%c5_153, %c0_154] : memref<8x128xf32, #tpu.memory_space<vmem>>, vector<1x128xf32>
    %244 = vector.broadcast %242 : vector<2x1xf32> to vector<2x128xf32>
    %245 = vector.broadcast %243 : vector<1x128xf32> to vector<2x128xf32>
    %246 = arith.mulf %244, %245 : vector<2x128xf32>
    %247 = arith.addf %206, %246 : vector<2x128xf32>
    %248 = vector.extract_strided_slice %5 {offsets = [0, 5], sizes = [2, 1], strides = [1, 1]} : vector<2x8xf32> to vector<2x1xf32>
    %249 = vector.broadcast %248 : vector<2x1xf32> to vector<2x256xf32>
    %250 = arith.mulf %249, %238 : vector<2x256xf32>
    %251 = arith.addf %210, %250 : vector<2x256xf32>
    %c0_155 = arith.constant 0 : index
    %c0_156 = arith.constant 0 : index
    %c0_157 = arith.constant 0 : index
    %252 = vector.load %arg3[%c0_155, %c0_156, %c0_157] : memref<4x2x256xf32, #tpu.memory_space<vmem>>, vector<1x2x256xf32>
    %253 = vector.shape_cast %252 : vector<1x2x256xf32> to vector<2x256xf32>
    %c6 = arith.constant 6 : index
    %c0_158 = arith.constant 0 : index
    %254 = memref.load %arg1[%c6, %c0_158] : memref<8x4xf32, #tpu.memory_space<smem>>
    %255 = vector.broadcast %254 : f32 to vector<2x256xf32>
    %256 = arith.mulf %253, %255 : vector<2x256xf32>
    %c1_159 = arith.constant 1 : index
    %c0_160 = arith.constant 0 : index
    %c0_161 = arith.constant 0 : index
    %257 = vector.load %arg3[%c1_159, %c0_160, %c0_161] : memref<4x2x256xf32, #tpu.memory_space<vmem>>, vector<1x2x256xf32>
    %258 = vector.shape_cast %257 : vector<1x2x256xf32> to vector<2x256xf32>
    %c6_162 = arith.constant 6 : index
    %c1_163 = arith.constant 1 : index
    %259 = memref.load %arg1[%c6_162, %c1_163] : memref<8x4xf32, #tpu.memory_space<smem>>
    %260 = vector.broadcast %259 : f32 to vector<2x256xf32>
    %261 = arith.mulf %258, %260 : vector<2x256xf32>
    %262 = arith.addf %256, %261 : vector<2x256xf32>
    %c2_164 = arith.constant 2 : index
    %c0_165 = arith.constant 0 : index
    %c0_166 = arith.constant 0 : index
    %263 = vector.load %arg3[%c2_164, %c0_165, %c0_166] : memref<4x2x256xf32, #tpu.memory_space<vmem>>, vector<1x2x256xf32>
    %264 = vector.shape_cast %263 : vector<1x2x256xf32> to vector<2x256xf32>
    %c6_167 = arith.constant 6 : index
    %c2_168 = arith.constant 2 : index
    %265 = memref.load %arg1[%c6_167, %c2_168] : memref<8x4xf32, #tpu.memory_space<smem>>
    %266 = vector.broadcast %265 : f32 to vector<2x256xf32>
    %267 = arith.mulf %264, %266 : vector<2x256xf32>
    %268 = arith.addf %262, %267 : vector<2x256xf32>
    %c3_169 = arith.constant 3 : index
    %c0_170 = arith.constant 0 : index
    %c0_171 = arith.constant 0 : index
    %269 = vector.load %arg3[%c3_169, %c0_170, %c0_171] : memref<4x2x256xf32, #tpu.memory_space<vmem>>, vector<1x2x256xf32>
    %270 = vector.shape_cast %269 : vector<1x2x256xf32> to vector<2x256xf32>
    %c6_172 = arith.constant 6 : index
    %c3_173 = arith.constant 3 : index
    %271 = memref.load %arg1[%c6_172, %c3_173] : memref<8x4xf32, #tpu.memory_space<smem>>
    %272 = vector.broadcast %271 : f32 to vector<2x256xf32>
    %273 = arith.mulf %270, %272 : vector<2x256xf32>
    %274 = arith.addf %268, %273 : vector<2x256xf32>
    %c6_174 = arith.constant 6 : index
    %275 = memref.load %arg2[%c6_174] : memref<8xf32, #tpu.memory_space<smem>>
    %276 = vector.broadcast %275 : f32 to vector<2x256xf32>
    %277 = arith.addf %274, %276 : vector<2x256xf32>
    %cst_175 = arith.constant 0.000000e+00 : f32
    %278 = vector.broadcast %cst_175 : f32 to vector<2x256xf32>
    %279 = arith.maximumf %277, %278 : vector<2x256xf32>
    %cst_176 = arith.constant dense<0.000000e+00> : vector<2xf32>
    %280 = vector.multi_reduction <add>, %279, %cst_176 [1] : vector<2x256xf32> to vector<2xf32>
    %281 = vector.shape_cast %280 : vector<2xf32> to vector<2x1xf32>
    %cst_177 = arith.constant 3.906250e-03 : f32
    %282 = vector.broadcast %cst_177 : f32 to vector<2x1xf32>
    %283 = arith.mulf %281, %282 : vector<2x1xf32>
    %c6_178 = arith.constant 6 : index
    %c0_179 = arith.constant 0 : index
    %284 = vector.load %arg4[%c6_178, %c0_179] : memref<8x128xf32, #tpu.memory_space<vmem>>, vector<1x128xf32>
    %285 = vector.broadcast %283 : vector<2x1xf32> to vector<2x128xf32>
    %286 = vector.broadcast %284 : vector<1x128xf32> to vector<2x128xf32>
    %287 = arith.mulf %285, %286 : vector<2x128xf32>
    %288 = arith.addf %247, %287 : vector<2x128xf32>
    %289 = vector.extract_strided_slice %5 {offsets = [0, 6], sizes = [2, 1], strides = [1, 1]} : vector<2x8xf32> to vector<2x1xf32>
    %290 = vector.broadcast %289 : vector<2x1xf32> to vector<2x256xf32>
    %291 = arith.mulf %290, %279 : vector<2x256xf32>
    %292 = arith.addf %251, %291 : vector<2x256xf32>
    %c0_180 = arith.constant 0 : index
    %c0_181 = arith.constant 0 : index
    %c0_182 = arith.constant 0 : index
    %293 = vector.load %arg3[%c0_180, %c0_181, %c0_182] : memref<4x2x256xf32, #tpu.memory_space<vmem>>, vector<1x2x256xf32>
    %294 = vector.shape_cast %293 : vector<1x2x256xf32> to vector<2x256xf32>
    %c7 = arith.constant 7 : index
    %c0_183 = arith.constant 0 : index
    %295 = memref.load %arg1[%c7, %c0_183] : memref<8x4xf32, #tpu.memory_space<smem>>
    %296 = vector.broadcast %295 : f32 to vector<2x256xf32>
    %297 = arith.mulf %294, %296 : vector<2x256xf32>
    %c1_184 = arith.constant 1 : index
    %c0_185 = arith.constant 0 : index
    %c0_186 = arith.constant 0 : index
    %298 = vector.load %arg3[%c1_184, %c0_185, %c0_186] : memref<4x2x256xf32, #tpu.memory_space<vmem>>, vector<1x2x256xf32>
    %299 = vector.shape_cast %298 : vector<1x2x256xf32> to vector<2x256xf32>
    %c7_187 = arith.constant 7 : index
    %c1_188 = arith.constant 1 : index
    %300 = memref.load %arg1[%c7_187, %c1_188] : memref<8x4xf32, #tpu.memory_space<smem>>
    %301 = vector.broadcast %300 : f32 to vector<2x256xf32>
    %302 = arith.mulf %299, %301 : vector<2x256xf32>
    %303 = arith.addf %297, %302 : vector<2x256xf32>
    %c2_189 = arith.constant 2 : index
    %c0_190 = arith.constant 0 : index
    %c0_191 = arith.constant 0 : index
    %304 = vector.load %arg3[%c2_189, %c0_190, %c0_191] : memref<4x2x256xf32, #tpu.memory_space<vmem>>, vector<1x2x256xf32>
    %305 = vector.shape_cast %304 : vector<1x2x256xf32> to vector<2x256xf32>
    %c7_192 = arith.constant 7 : index
    %c2_193 = arith.constant 2 : index
    %306 = memref.load %arg1[%c7_192, %c2_193] : memref<8x4xf32, #tpu.memory_space<smem>>
    %307 = vector.broadcast %306 : f32 to vector<2x256xf32>
    %308 = arith.mulf %305, %307 : vector<2x256xf32>
    %309 = arith.addf %303, %308 : vector<2x256xf32>
    %c3_194 = arith.constant 3 : index
    %c0_195 = arith.constant 0 : index
    %c0_196 = arith.constant 0 : index
    %310 = vector.load %arg3[%c3_194, %c0_195, %c0_196] : memref<4x2x256xf32, #tpu.memory_space<vmem>>, vector<1x2x256xf32>
    %311 = vector.shape_cast %310 : vector<1x2x256xf32> to vector<2x256xf32>
    %c7_197 = arith.constant 7 : index
    %c3_198 = arith.constant 3 : index
    %312 = memref.load %arg1[%c7_197, %c3_198] : memref<8x4xf32, #tpu.memory_space<smem>>
    %313 = vector.broadcast %312 : f32 to vector<2x256xf32>
    %314 = arith.mulf %311, %313 : vector<2x256xf32>
    %315 = arith.addf %309, %314 : vector<2x256xf32>
    %c7_199 = arith.constant 7 : index
    %316 = memref.load %arg2[%c7_199] : memref<8xf32, #tpu.memory_space<smem>>
    %317 = vector.broadcast %316 : f32 to vector<2x256xf32>
    %318 = arith.addf %315, %317 : vector<2x256xf32>
    %cst_200 = arith.constant 0.000000e+00 : f32
    %319 = vector.broadcast %cst_200 : f32 to vector<2x256xf32>
    %320 = arith.maximumf %318, %319 : vector<2x256xf32>
    %cst_201 = arith.constant dense<0.000000e+00> : vector<2xf32>
    %321 = vector.multi_reduction <add>, %320, %cst_201 [1] : vector<2x256xf32> to vector<2xf32>
    %322 = vector.shape_cast %321 : vector<2xf32> to vector<2x1xf32>
    %cst_202 = arith.constant 3.906250e-03 : f32
    %323 = vector.broadcast %cst_202 : f32 to vector<2x1xf32>
    %324 = arith.mulf %322, %323 : vector<2x1xf32>
    %c7_203 = arith.constant 7 : index
    %c0_204 = arith.constant 0 : index
    %325 = vector.load %arg4[%c7_203, %c0_204] : memref<8x128xf32, #tpu.memory_space<vmem>>, vector<1x128xf32>
    %326 = vector.broadcast %324 : vector<2x1xf32> to vector<2x128xf32>
    %327 = vector.broadcast %325 : vector<1x128xf32> to vector<2x128xf32>
    %328 = arith.mulf %326, %327 : vector<2x128xf32>
    %329 = arith.addf %288, %328 : vector<2x128xf32>
    %330 = vector.extract_strided_slice %5 {offsets = [0, 7], sizes = [2, 1], strides = [1, 1]} : vector<2x8xf32> to vector<2x1xf32>
    %331 = vector.broadcast %330 : vector<2x1xf32> to vector<2x256xf32>
    %332 = arith.mulf %331, %320 : vector<2x256xf32>
    %333 = arith.addf %292, %332 : vector<2x256xf32>
    %c0_205 = arith.constant 0 : index
    %c0_206 = arith.constant 0 : index
    %334 = vector.load %arg7[%c0_205, %c0_206] : memref<2x128xf32, #tpu.memory_space<vmem>>, vector<2x128xf32>
    tpu.vector_store %arg7[%c0_205, %c0_206], %329 {strides = array<i32>} : memref<2x128xf32, #tpu.memory_space<vmem>>, vector<2x128xf32>,
    %cst_207 = arith.constant 0.000000e+00 : f32
    %335 = vector.broadcast %cst_207 : f32 to vector<2x256xf32>
    %336 = arith.maximumf %333, %335 : vector<2x256xf32>
    %cst_208 = arith.constant dense<0x7F800000> : vector<2xf32>
    %337 = vector.multi_reduction <minimumf>, %336, %cst_208 [1] : vector<2x256xf32> to vector<2xf32>
    %338 = vector.shape_cast %337 : vector<2xf32> to vector<2x1xf32>
    %cst_209 = arith.constant dense<0xFF800000> : vector<2xf32>
    %339 = vector.multi_reduction <maximumf>, %336, %cst_209 [1] : vector<2x256xf32> to vector<2xf32>
    %340 = vector.shape_cast %339 : vector<2xf32> to vector<2x1xf32>
    %341 = vector.broadcast %338 : vector<2x1xf32> to vector<2x256xf32>
    %342 = arith.subf %336, %341 : vector<2x256xf32>
    %343 = arith.subf %340, %338 : vector<2x1xf32>
    %cst_210 = arith.constant 9.99999993E-9 : f32
    %344 = vector.broadcast %cst_210 : f32 to vector<2x1xf32>
    %345 = arith.addf %343, %344 : vector<2x1xf32>
    %346 = vector.broadcast %345 : vector<2x1xf32> to vector<2x256xf32>
    %347 = arith.divf %342, %346 : vector<2x256xf32>
    %c0_211 = arith.constant 0 : index
    %c0_212 = arith.constant 0 : index
    %348 = vector.load %arg8[%c0_211, %c0_212] : memref<2x256xf32, #tpu.memory_space<vmem>>, vector<2x256xf32>
    tpu.vector_store %arg8[%c0_211, %c0_212], %347 {strides = array<i32>} : memref<2x256xf32, #tpu.memory_space<vmem>>, vector<2x256xf32>,
    return
  }
  func.func @transform_0(%arg0: i32) -> (i32, i32) {
    %c0_i32 = arith.constant 0 : i32
    %c0_i32_0 = arith.constant 0 : i32
    %c0_i32_1 = arith.constant 0 : i32
    return %c0_i32, %c0_i32_0 : i32, i32
  }
  func.func @transform_1(%arg0: i32) -> i32 {
    %c0_i32 = arith.constant 0 : i32
    %c0_i32_0 = arith.constant 0 : i32
    return %c0_i32 : i32
  }
  func.func @transform_2(%arg0: i32) -> (i32, i32, i32) {
    %c0_i32 = arith.constant 0 : i32
    %c0_i32_0 = arith.constant 0 : i32
    %c0_i32_1 = arith.constant 0 : i32
    return %c0_i32, %arg0, %c0_i32_0 : i32, i32, i32
  }
  func.func @transform_3(%arg0: i32) -> (i32, i32) {
    %c0_i32 = arith.constant 0 : i32
    %c0_i32_0 = arith.constant 0 : i32
    %c0_i32_1 = arith.constant 0 : i32
    return %c0_i32, %c0_i32_0 : i32, i32
  }
  func.func @transform_4(%arg0: i32) -> (i32, i32) {
    %c0_i32 = arith.constant 0 : i32
    %c0_i32_0 = arith.constant 0 : i32
    %c0_i32_1 = arith.constant 0 : i32
    return %c0_i32, %c0_i32_0 : i32, i32
  }
  func.func @transform_5(%arg0: i32) -> (i32, i32) {
    %c0_i32 = arith.constant 0 : i32
    %c0_i32_0 = arith.constant 0 : i32
    return %arg0, %c0_i32 : i32, i32
  }
  func.func @transform_6(%arg0: i32) -> (i32, i32) {
    %c0_i32 = arith.constant 0 : i32
    %c0_i32_0 = arith.constant 0 : i32
    return %arg0, %c0_i32 : i32, i32
  }
  func.func @transform_7(%arg0: i32) -> (i32, i32) {
    %c0_i32 = arith.constant 0 : i32
    %c0_i32_0 = arith.constant 0 : i32
    return %arg0, %c0_i32 : i32, i32
  }
}

</mosaic_0001>

<bundles_post_ra>
// kernel: tpu_custom_call.1
= control target key start
LH: loop header
LB: loop body
LE: loop exit
PB: predicated region body
PF: predicated region fallthrough
CT: control target
= control target key end

     0   :  { %13 = vsyncpa [#allocation5], 0  ;;  %s1011_s0 = inlined_call_operand.vmem [shape: f32[8,4], index: 0, kind: input, shape index: {}]   ;;  %s1012_s1 = inlined_call_operand.vmem [shape: f32[8], index: 1, kind: input, shape index: {}]   ;;  %s1013_s2 = inlined_call_operand.hbm [shape: f32[4,2,256], index: 2, kind: input, shape index: {}]   ;;  %s1014_s3 = inlined_call_operand.vmem [shape: f32[8,128], index: 3, kind: input, shape index: {}]   ;;  %s1015_s4 = inlined_call_operand.vmem [shape: f32[1,128], index: 4, kind: input, shape index: {}]   ;;  %s1016_s5 = inlined_call_operand.vmem [shape: f32[2,8], index: 5, kind: input, shape index: {}]   ;;  %s1017_s6 = inlined_call_operand.hbm [shape: f32[2,128], index: 6, kind: output, shape index: {0}]   ;;  %s1018_s7 = inlined_call_operand.hbm [shape: f32[2,256], index: 7, kind: output, shape index: {1}]  }
   0x1   :  { %14 = vsyncpa [#allocation7], 0 }
   0x2   :  { %15 = vsyncpa [#allocation3], 0 }
   0x3   :  { %16 = vsyncpa [#allocation4], 0 }
   0x4   :  { %17 = vsyncpa [#allocation11], 0  ;;  %s24_s26 = sshll.u32 %s1011_s0, 4  ;;  %s34_s29 = sshll.u32 %s1012_s1, 4  ;;  %s25_s26 = int_to_ptr.vmem [resolvable:$true] %s24_s26  ;;  %s35_s29 = int_to_ptr.vmem [resolvable:$true] %s34_s29 }
   0x5   :  { %s630_s30 = scalar_lea.vmem %s25_s26, 128  ;;  %p635_p1 = scmp.lt.s32.totalorder %s25_s26, %s25_s26 }
   0x6   :  { %p631_p0 = scmp.ne.s32.totalorder %s25_s26, %s630_s30  ;;  %p636_p2 = scmp.lt.s32.totalorder %s630_s30, %s630_s30 }
   0x8   :  { %p637_p3 = por %p636_p2, %p635_p1 }
   0xa   :  { %p638_p4 = pnand %p637_p3, %p631_p0 }
   0xc   :  { %641 = shalt.err (!%p638_p4)
}
   0xd   :  { %s724_s8 = smov [#allocation2]   ;;  %s642_s9 = scalar_lea.vmem %s35_s29, 16 }
   0xe   :  { %27 = dma.vmem_to_smem %s25_s26, 128, %s724_s8, [#allocation5]  }
   0xf   :  { %p643_p5 = scmp.ne.s32.totalorder %s35_s29, %s642_s9  ;;  %p647_p6 = scmp.lt.s32.totalorder %s35_s29, %s35_s29 }
  0x10   :  { %p648_p7 = scmp.lt.s32.totalorder %s642_s9, %s642_s9 }
  0x12   :  { %p649_p8 = por %p648_p7, %p647_p6 }
  0x14   :  { %p650_p9 = pnand %p649_p8, %p643_p5 }
  0x16   :  { %653 = shalt.err (!%p650_p9)
}
  0x17   :  { %s725_s0 = smov [#allocation6]   ;;  %s726_s1 = smov [#allocation8]  }
  0x18   :  { %37 = dma.vmem_to_smem %s35_s29, 16, %s725_s0, [#allocation7]  }
  0x19   :  { %s43_s10 = sshll.u32 %s726_s1, 4  ;;  %s44_s10 = int_to_ptr.vmem [resolvable:$true] %s43_s10 }
  0x1a   :  { %s662_s11 = scalar_lea.vmem %s44_s10, 256  ;;  %p667_p11 = scmp.lt.s32.totalorder %s44_s10, %s44_s10 }
  0x1b   :  { %p663_p10 = scmp.ne.s32.totalorder %s44_s10, %s662_s11  ;;  %p668_p12 = scmp.lt.s32.totalorder %s662_s11, %s662_s11 }
  0x1d   :  { %p669_p13 = por %p668_p12, %p667_p11 }
  0x1f   :  { %p670_p0 = pnand %p669_p13, %p663_p10 }
  0x21   :  { %673 = shalt.err (!%p670_p0)
}
  0x22   :  { %s727_s12 = smov 64   ;;  %s728_s13 = smov 4  }
  0x23   :  { %49 = dma.hbm_to_vmem [thread:$0]  %s1013_s2, 256, %s44_s10, [#allocation3], %s727_s12, %s727_s12, %s728_s13  }
  0x24   :  { %714 = dma.done.wait [#allocation5], 128  }
  0x25   :  { %715 = vsyncadd [#allocation5], 4294967168 }
  0x26   :  { %716 = dma.done.wait [#allocation7], 16  }
  0x27   :  { %717 = vsyncadd [#allocation7], 4294967280 }
  0x28   :  { %718 = dma.done.wait [#allocation3], 256  }
  0x29   :  { %719 = vsyncadd [#allocation3], 4294967040 }
  0x2a   :  { %65 = sfence }
  0x2b   :  { %v792_v0 = vld [vmem:[%s1016_s5] sm:$0x3]  ;;  %v729_v1 = vmov 1   ;;  %s76_s18 = sld [smem:[#allocation2]]  ;;  %v730_v2 = vmov 0   ;;  %v731_v5 = vmov 3   ;;  %v105_v11 = vlaneseq }
  0x2c   :  { %620 = vset.pattern.permute.xlu1 %v729_v1  ;;  %s556_s19 = sld [smem:[#allocation2 + $0x1]]  ;;  %619 = vset.pattern.permute.xlu0 %v730_v2  ;;  %v795_v3 = vld [vmem:[#allocation8] sm:$0xf]  ;;  %v799_v4 = vld [vmem:[#allocation8 + $0x4] sm:$0xf]  ;;  %vm112_vm0 = vcmask 1041408  }
  0x2d   :  { %179 = vperm.xlu1 %620, %v792_v0   ;;  %s557_s20 = sld [smem:[#allocation2 + $0x2]]  ;;  %v801_v7 = vld [vmem:[#allocation8 + $0x8] sm:$0xf]  ;;  %v804_v10 = vld [vmem:[#allocation8 + $0xc] sm:$0xf]  ;;  %v106_v20 = vshrl.u32 %v105_v11, 7 }
  0x2e   :  { %s558_s2 = sld [smem:[#allocation2 + $0x3]]  ;;  %v732_v14 = vmov 1983009808  }
  0x2f   :  { %s797_s21 = sld [smem:[#allocation6]]  ;;  %v103_v15 = vunpack.c.l.s4 %v732_v14 }
  0x30   :  { %s560_s22 = sld [smem:[#allocation2 + $0x80]] }
  0x31   :  { %622 = vset.pattern.permute.xlu1 %v731_v5  ;;  %v77_v6 = vstv %s76_s18  ;;  %s561_s5 = sld [smem:[#allocation2 + $0x81]]  ;;  %v104_v23 = vunpack.c.0.s8 %v103_v15 }
  0x32   :  { %v78_v8 = vmul.f32 %v77_v6, %v795_v3  ;;  %v82_v9 = vstv %s556_s19  ;;  %s562_s23 = sld [smem:[#allocation2 + $0x82]] }
  0x33   :  { %v83_v12 = vmul.f32 %v82_v9, %v799_v4  ;;  %v88_v13 = vstv %s557_s20  ;;  %s563_s24 = sld [smem:[#allocation2 + $0x83]]  ;;  %v818_v35 = vsub.s32 %v104_v23, %v106_v20 }
  0x34   :  { %v89_v16 = vmul.f32 %v88_v13, %v801_v7  ;;  %v94_v17 = vstv %s558_s2  ;;  %s808_s25 = sld [smem:[#allocation6 + $0x1]] }
  0x35   :  { %v84_v18 = vadd.f32 %v83_v12, %v78_v8  ;;  %v95_v19 = vmul.f32 %v94_v17, %v804_v10  ;;  %s566_s26 = sld [smem:[#allocation2 + $0x100]]  ;;  %v98_v26 = vstv %s797_s21 }
  0x36   :  { %v136_v21 = vstv %s560_s22  ;;  %s567_s27 = sld [smem:[#allocation2 + $0x101]] }
  0x37   :  { %v90_v22 = vadd.f32 %v89_v16, %v84_v18  ;;  %v137_v24 = vmul.f32 %v136_v21, %v795_v3  ;;  %v139_v25 = vstv %s561_s5  ;;  %s568_s28 = sld [smem:[#allocation2 + $0x102]] }
  0x38   :  { %v140_v27 = vmul.f32 %v139_v25, %v799_v4  ;;  %v143_v28 = vstv %s562_s23  ;;  %s569_s29 = sld [smem:[#allocation2 + $0x103]] }
  0x39   :  { %v96_v29 = vadd.f32 %v95_v19, %v90_v22  ;;  %v144_v30 = vmul.f32 %v143_v28, %v801_v7  ;;  %v147_v31 = vstv %s563_s24  ;;  %s816_s30 = sld [smem:[#allocation6 + $0x2]] }
  0x3a   :  { %v141_v32 = vadd.f32 %v140_v27, %v137_v24  ;;  %v148_v33 = vmul.f32 %v147_v31, %v804_v10  ;;  %v151_v41 = vstv %s808_s25  ;;  %s828_s8 = sld [smem:[#allocation2 + $0x180]] }
  0x3b   :  { %v99_v34 = vadd.f32 %v98_v26, %v96_v29  ;;  %v187_v36 = vstv %s566_s26  ;;  %s836_s9 = sld [smem:[#allocation2 + $0x181]] }
  0x3c   :  { %v145_v37 = vadd.f32 %v144_v30, %v141_v32  ;;  %v188_v38 = vmul.f32 %v187_v36, %v795_v3  ;;  %v190_v39 = vstv %s567_s27  ;;  %s839_s0 = sld [smem:[#allocation2 + $0x182]] }
  0x3d   :  { %v100_v40 = vmax.f32 %v99_v34, 0.0  ;;  %v191_v42 = vmul.f32 %v190_v39, %v799_v4  ;;  %v194_v43 = vstv %s568_s28  ;;  %s843_s1 = sld [smem:[#allocation2 + $0x200]] }
  0x3e   :  { %v149_v44 = vadd.f32 %v148_v33, %v145_v37  ;;  %v195_v45 = vmul.f32 %v194_v43, %v801_v7  ;;  %v198_v46 = vstv %s569_s29  ;;  %s584_s10 = sld [smem:[#allocation2 + $0x280]] }
  0x3f   :  { %v825_v47 = vrot.slane %v100_v40, %v818_v35  ;;  %v192_v48 = vadd.f32 %v191_v42, %v188_v38  ;;  %v199_v49 = vmul.f32 %v198_v46, %v804_v10  ;;  %v202_v55 = vstv %s816_s30  ;;  %s585_s11 = sld [smem:[#allocation2 + $0x281]] }
  0x40   :  { %v152_v50 = vadd.f32 %v151_v41, %v149_v44  ;;  %s586_s12 = sld [smem:[#allocation2 + $0x282]]  ;;  %v238_v33 = vstv %s828_s8 }
  0x41   :  { %v832_v51 = vcombine.high %v825_v47, %v825_v47  ;;  %v113_v52 = vsel %vm112_vm0, %v825_v47, 0.0  ;;  %v196_v53 = vadd.f32 %v195_v45, %v192_v48  ;;  %s587_s13 = sld [smem:[#allocation2 + $0x283]]  ;;  %v241_v34 = vstv %s836_s9 }
  0x42   :  { %v153_v54 = vmax.f32 %v152_v50, 0.0  ;;  %s852_s14 = sld [smem:[#allocation6 + $0x5]]  ;;  %v239_v46 = vmul.f32 %v238_v33, %v795_v3  ;;  %v245_v48 = vstv %s839_s0 }
  0x43   :  { %v114_v56 = vsel %vm112_vm0, %v832_v51, 0.0  ;;  %v200_v57 = vadd.f32 %v199_v49, %v196_v53  ;;  %s590_s15 = sld [smem:[#allocation2 + $0x300]] }
  0x44   :  { %v115_v58 = vadd.f32 %v114_v56, %v113_v52  ;;  %v846_v59 = vrot.slane %v153_v54, %v818_v35  ;;  %v340_v5 = vstv %s584_s10  ;;  %s591_s16 = sld [smem:[#allocation2 + $0x301]]  ;;  %v242_v52 = vmul.f32 %v241_v34, %v799_v4 }
  0x45   :  { %v203_v60 = vadd.f32 %v202_v55, %v200_v57  ;;  %s865_s17 = sld [smem:[#allocation2 + $0x302]]  ;;  %v341_v9 = vmul.f32 %v340_v5, %v795_v3  ;;  %v343_v11 = vstv %s585_s11  ;;  %v289_v56 = vstv %s843_s1 }
  0x46   :  { %116 = vadd.xlane.f32.xlu0 %v115_v58  ;;  %v850_v61 = vcombine.high %v846_v59, %v846_v59  ;;  %v165_v63 = vsel %vm112_vm0, %v846_v59, 0.0  ;;  %v347_v12 = vstv %s586_s12  ;;  %s593_s18 = sld [smem:[#allocation2 + $0x303]]  ;;  %v344_v15 = vmul.f32 %v343_v11, %v799_v4 }
  0x47   :  { %v204_v62 = vmax.f32 %v203_v60, 0.0  ;;  %s873_s19 = sld [smem:[#allocation6 + $0x6]]  ;;  %v348_v16 = vmul.f32 %v347_v12, %v801_v7  ;;  %v351_v17 = vstv %s587_s13  ;;  %v737_v34 = vmov 6  }
  0x48   :  { %v166_v1 = vsel %vm112_vm0, %v850_v61, 0.0  ;;  %s596_s20 = sld [smem:[#allocation2 + $0x380]]  ;;  %v345_v18 = vadd.f32 %v344_v15, %v341_v9  ;;  %v352_v19 = vmul.f32 %v351_v17, %v804_v10  ;;  %v355_v24 = vstv %s852_s14 }
  0x49   :  { %v859_v2 = vrot.slane %v204_v62, %v818_v35  ;;  %v167_v8 = vadd.f32 %v166_v1, %v165_v63  ;;  %s877_s2 = sld [smem:[#allocation2 + $0x381]]  ;;  %v391_v21 = vstv %s590_s15  ;;  %v246_v62 = vmul.f32 %v245_v48, %v801_v7 }
  0x4a   :  { %v394_v22 = vstv %s591_s16  ;;  %s598_s21 = sld [smem:[#allocation2 + $0x382]]  ;;  %v349_v23 = vadd.f32 %v348_v16, %v345_v18  ;;  %v392_v25 = vmul.f32 %v391_v21, %v795_v3  ;;  %v290_v9 = vmul.f32 %v289_v56, %v795_v3 }
  0x4b   :  { %v863_v6 = vcombine.high %v859_v2, %v859_v2  ;;  %v216_v13 = vsel %vm112_vm0, %v859_v2, 0.0  ;;  %s880_s22 = sld [smem:[#allocation2 + $0x383]]  ;;  %v395_v26 = vmul.f32 %v394_v22, %v799_v4  ;;  %v398_v27 = vstv %s865_s17 }
  0x4c   :  { %s882_s5 = sld [smem:[#allocation2 + $0x201]]  ;;  %v402_v28 = vstv %s593_s18  ;;  %v353_v29 = vadd.f32 %v352_v19, %v349_v23  ;;  %v399_v30 = vmul.f32 %v398_v27, %v801_v7  ;;  %v733_v16 = vmov 2  }
  0x4d   :  { %v217_v14 = vsel %vm112_vm0, %v863_v6, 0.0  ;;  %s887_s23 = sld [smem:[#allocation2 + $0x183]]  ;;  %v396_v31 = vadd.f32 %v395_v26, %v392_v25  ;;  %v403_v32 = vmul.f32 %v402_v28, %v804_v10  ;;  %v406_v43 = vstv %s873_s19 }
  0x4e   :  { %v218_v20 = vadd.f32 %v217_v14, %v216_v13  ;;  %s891_s24 = sld [smem:[#allocation6 + $0x7]]  ;;  %v356_v36 = vadd.f32 %v355_v24, %v353_v29  ;;  %v442_v37 = vstv %s596_s20  ;;  %v734_v25 = vmov 7  }
  0x4f   :  { %s895_s25 = sld [smem:[#allocation2 + $0x202]]  ;;  %v400_v38 = vadd.f32 %v399_v30, %v396_v31  ;;  %v443_v39 = vmul.f32 %v442_v37, %v795_v3  ;;  %v445_v40 = vstv %s877_s2  ;;  %v735_v27 = vmov 4   ;;  %s738_s2 = smov [#allocation9]  }
  0x50   :  { %v449_v41 = vstv %s598_s21  ;;  %v357_v42 = vmax.f32 %v356_v36, 0.0  ;;  %v446_v44 = vmul.f32 %v445_v40, %v799_v4  ;;  %s581_s26 = sld [smem:[#allocation2 + $0x203]]  ;;  %s530_s21 = sshll.u32 %s738_s2, 4  ;;  %s531_s21 = int_to_ptr.vmem [resolvable:$true] %s530_s21 }
  0x51   :  { %168 = vadd.xlane.f32.xlu1 %v167_v8  ;;  %v450_v45 = vmul.f32 %v449_v41, %v801_v7  ;;  %v404_v49 = vadd.f32 %v403_v32, %v400_v38  ;;  %v453_v50 = vstv %s880_s22  ;;  %v243_v8 = vadd.f32 %v242_v52, %v239_v46  ;;  %s576_s27 = sld [smem:[#allocation6 + $0x3]]  ;;  %s674_s22 = scalar_lea.vmem %s531_s21, 32 }
  0x52   :  { %v907_v53 = vrot.slane %v357_v42, %v818_v35  ;;  %v447_v54 = vadd.f32 %v446_v44, %v443_v39  ;;  %v454_v55 = vmul.f32 %v453_v50, %v804_v10  ;;  %v292_v57 = vstv %s882_s5  ;;  %s582_s28 = sld [smem:[#allocation6 + $0x4]]  ;;  %p675_p1 = scmp.ne.s32.totalorder %s531_s21, %s674_s22 }
  0x53   :  { %v407_v58 = vadd.f32 %v406_v43, %v404_v49  ;;  %v249_v63 = vstv %s887_s23  ;;  %v293_v11 = vmul.f32 %v292_v57, %v799_v4  ;;  %v247_v18 = vadd.f32 %v246_v62, %v243_v8  ;;  %v565_v8 = vld [vmem:[%s1014_s3 + $0x1] ss:$0 sm:$0xff]  ;;  %p679_p2 = scmp.lt.s32.totalorder %s531_s21, %s531_s21  ;;  %p680_p3 = scmp.lt.s32.totalorder %s674_s22, %s674_s22 }
  0x54   :  { %v451_v60 = vadd.f32 %v450_v45, %v447_v54  ;;  %v457_v5 = vstv %s891_s24  ;;  %v250_v17 = vmul.f32 %v249_v63, %v804_v10  ;;  %v736_v32 = vmov 5   ;;  %v559_v63 = vld [vmem:[%s1014_s3] ss:$0 sm:$0xff] }
  0x55   :  { %219 = vadd.xlane.f32.xlu1 %v218_v20  ;;  %v408_v1 = vmax.f32 %v407_v58, 0.0  ;;  %v296_v13 = vstv %s895_s25  ;;  %v294_v19 = vadd.f32 %v293_v11, %v290_v9  ;;  %v366_v54 = vcombine.high %v907_v53, %v907_v53  ;;  %p681_p4 = por %p680_p3, %p679_p2 }
  0x56   :  { %v455_v12 = vadd.f32 %v454_v55, %v451_v60  ;;  %v297_v20 = vmul.f32 %v296_v13, %v801_v7  ;;  %v300_v21 = vstv %s581_s26  ;;  %v251_v22 = vadd.f32 %v250_v17, %v247_v18 }
  0x57   :  { %v920_v14 = vrot.slane %v408_v1, %v818_v35  ;;  %v301_v24 = vmul.f32 %v300_v21, %v804_v10  ;;  %v253_v26 = vstv %s576_s27  ;;  %v369_v55 = vsel %vm112_vm0, %v907_v53, 0.0  ;;  %p682_p5 = pnand %p681_p4, %p675_p1 }
  0x58   :  { %v458_v15 = vadd.f32 %v457_v5, %v455_v12  ;;  %v298_v23 = vadd.f32 %v297_v20, %v294_v19  ;;  %v254_v28 = vadd.f32 %v253_v26, %v251_v22  ;;  %v304_v7 = vstv %s582_s28  ;;  %v555_v5 = vld [vmem:[%s1015_s4] ss:$0 sm:$0xff] }
  0x59   :  { %v417_v44 = vcombine.high %v920_v14, %v920_v14  ;;  %v370_v56 = vsel %vm112_vm0, %v366_v54, 0.0 }
  0x5a   :  { %v459_v3 = vmax.f32 %v458_v15, 0.0  ;;  %v302_v29 = vadd.f32 %v301_v24, %v298_v23  ;;  %v255_v30 = vmax.f32 %v254_v28, 0.0  ;;  %v371_v57 = vadd.f32 %v370_v56, %v369_v55  ;;  %v571_v15 = vld [vmem:[%s1014_s3 + $0x2] ss:$0 sm:$0xff] }
  0x5c   :  { %128 = vperm.xlu0 %619, %v792_v0   ;;  %v926_v4 = vrot.slane %v459_v3, %v818_v35  ;;  %v305_v31 = vadd.f32 %v304_v7, %v302_v29  ;;  %v933_v33 = vrot.slane %v255_v30, %v818_v35 }
  0x5e   :  { %v306_v10 = vmax.f32 %v305_v31, 0.0  ;;  %v264_v36 = vcombine.high %v933_v33, %v933_v33  ;;  %v267_v38 = vsel %vm112_vm0, %v933_v33, 0.0  ;;  %v952_v46 = vcombine.high %v926_v4, %v926_v4 }
  0x5f   :  { %v471_v49 = vsel %vm112_vm0, %v926_v4, 0.0 }
  0x60   :  { %621 = vset.pattern.permute.xlu0 %v733_v16  ;;  %v314_v37 = vrot.slane %v306_v10, %v818_v35  ;;  %v268_v39 = vsel %vm112_vm0, %v264_v36, 0.0  ;;  %v420_v35 = vsel %vm112_vm0, %v920_v14, 0.0  ;;  %v472_v50 = vsel %vm112_vm0, %v952_v46, 0.0 }
  0x61   :  { %230 = vperm.xlu0 %621, %v792_v0   ;;  %v269_v41 = vadd.f32 %v268_v39, %v267_v38  ;;  %v473_v52 = vadd.f32 %v472_v50, %v471_v49 }
  0x62   :  { %v315_v40 = vcombine.high %v314_v37, %v314_v37  ;;  %v318_v42 = vsel %vm112_vm0, %v314_v37, 0.0 }
  0x64   :  { %v319_v43 = vsel %vm112_vm0, %v315_v40, 0.0 }
  0x65   :  { %627 = vset.pattern.permute.xlu0 %v734_v25  ;;  %v320_v45 = vadd.f32 %v319_v43, %v318_v42 }
  0x66   :  { %281 = vperm.xlu1 %622, %v792_v0  }
  0x6a   :  { %623 = vset.pattern.permute.xlu1 %v735_v27 }
  0x6b   :  { %332 = vperm.xlu1 %623, %v792_v0  }
  0x6f   :  { %624 = vset.pattern.permute.xlu1 %v736_v32 }
  0x70   :  { %383 = vperm.xlu1 %624, %v792_v0  }
  0x74   :  { %625 = vset.pattern.permute.xlu1 %v737_v34 }
  0x75   :  { %434 = vperm.xlu1 %625, %v792_v0  }
  0x79   :  { %626 = vset.pattern.permute.xlu1 %v734_v25 }
  0x7a   :  { %485 = vperm.xlu1 %626, %v792_v0   ;;  %v421_v0 = vsel %vm112_vm0, %v417_v44, 0.0 }
  0x7b   :  { %v422_v48 = vadd.f32 %v421_v0, %v420_v35 }
  0x80   :  { %270 = vadd.xlane.f32.xlu0 %v269_v41 }
  0x84   :  { %321 = vadd.xlane.f32.xlu0 %v320_v45 }
  0x88   :  { %423 = vadd.xlane.f32.xlu0 %v422_v48 }
  0x8c   :  { %474 = vadd.xlane.f32.xlu0 %v473_v52 }
  0x9e   :  { %372 = vadd.xlane.f32.xlu1 %v371_v57 }
  0xa8   :  { %v180_v62 = vpop.permute.xlu1 %179 }
  0xa9   :  { %v182_v26 = vmul.f32 %v180_v62, %v846_v59  ;;  %v183_v27 = vmul.f32 %v180_v62, %v850_v61  ;;  %v577_v62 = vld [vmem:[%s1014_s3 + $0x3] ss:$0 sm:$0xff] }
  0xcf   :  { %v117_v58 = vpop.xlane.xlu0 %116 }
  0xd0   :  { %v118_v60 = vmul.f32 0.00390625, %v117_v58 }
  0xd2   :  { %v124_v1 = vmul.f32 %v559_v63, %v118_v60 }
  0xd4   :  { %v125_v12 = vadd.f32 %v555_v5, %v124_v1  ;;  %v583_v1 = vld [vmem:[%s1014_s3 + $0x4] ss:$0 sm:$0xff] }
  0xd7   :  { %v129_v18 = vpop.permute.xlu0 %128 }
  0xd8   :  { %v131_v24 = vmul.f32 %v129_v18, %v825_v47  ;;  %v132_v25 = vmul.f32 %v129_v18, %v832_v51 }
  0xda   :  { %v169_v9 = vpop.xlane.xlu1 %168  ;;  %v184_v30 = vadd.f32 %v182_v26, %v131_v24  ;;  %v185_v31 = vadd.f32 %v183_v27, %v132_v25 }
  0xdb   :  { %v170_v11 = vmul.f32 0.00390625, %v169_v9 }
  0xdc   :  { %v231_v23 = vpop.permute.xlu0 %230 }
  0xdd   :  { %v176_v13 = vmul.f32 %v565_v8, %v170_v11  ;;  %v233_v28 = vmul.f32 %v231_v23, %v859_v2  ;;  %v234_v29 = vmul.f32 %v231_v23, %v863_v6 }
  0xde   :  { %v220_v16 = vpop.xlane.xlu1 %219 }
  0xdf   :  { %v221_v17 = vmul.f32 0.00390625, %v220_v16  ;;  %v177_v19 = vadd.f32 %v176_v13, %v125_v12  ;;  %v235_v34 = vadd.f32 %v233_v28, %v184_v30  ;;  %v236_v38 = vadd.f32 %v234_v29, %v185_v31  ;;  %v589_v12 = vld [vmem:[%s1014_s3 + $0x5] ss:$0 sm:$0xff] }
  0xe1   :  { %v227_v20 = vmul.f32 %v571_v15, %v221_v17  ;;  %v595_v15 = vld [vmem:[%s1014_s3 + $0x6] ss:$0 sm:$0xff] }
  0xe2   :  { %v282_v3 = vpop.permute.xlu1 %281 }
  0xe3   :  { %v228_v21 = vadd.f32 %v227_v20, %v177_v19  ;;  %v284_v32 = vmul.f32 %v282_v3, %v933_v33  ;;  %v285_v10 = vmul.f32 %v282_v3, %v264_v36  ;;  %v601_v19 = vld [vmem:[%s1014_s3 + $0x7] ss:$0 sm:$0xff] }
  0xe5   :  { %v286_v41 = vadd.f32 %v284_v32, %v235_v34  ;;  %v287_v51 = vadd.f32 %v285_v10, %v236_v38 }
  0xe6   :  { %v333_v22 = vpop.permute.xlu1 %332 }
  0xe7   :  { %v335_v39 = vmul.f32 %v333_v22, %v314_v37  ;;  %v336_v47 = vmul.f32 %v333_v22, %v315_v40 }
  0xe9   :  { %v337_v43 = vadd.f32 %v335_v39, %v286_v41  ;;  %v338_v2 = vadd.f32 %v336_v47, %v287_v51 }
  0xeb   :  { %v384_v7 = vpop.permute.xlu1 %383 }
  0xec   :  { %v386_v59 = vmul.f32 %v384_v7, %v907_v53  ;;  %v387_v42 = vmul.f32 %v384_v7, %v366_v54 }
  0xee   :  { %v388_v35 = vadd.f32 %v386_v59, %v337_v43  ;;  %v389_v0 = vadd.f32 %v387_v42, %v338_v2 }
  0xf0   :  { %v435_v61 = vpop.permute.xlu1 %434 }
  0xf1   :  { %v437_v6 = vmul.f32 %v435_v61, %v920_v14  ;;  %v438_v45 = vmul.f32 %v435_v61, %v417_v44 }
  0xf3   :  { %v439_v33 = vadd.f32 %v437_v6, %v388_v35  ;;  %v440_v36 = vadd.f32 %v438_v45, %v389_v0 }
  0xf5   :  { %v486_v48 = vpop.permute.xlu1 %485 }
  0xf6   :  { %v488_v49 = vmul.f32 %v486_v48, %v926_v4  ;;  %v489_v37 = vmul.f32 %v486_v48, %v952_v46 }
  0xf8   :  { %v490_v40 = vadd.f32 %v488_v49, %v439_v33  ;;  %v491_v50 = vadd.f32 %v489_v37, %v440_v36 }
  0xfa   :  { %v493_v52 = vmax.f32 %v490_v40, 0.0  ;;  %v494_v53 = vmax.f32 %v491_v50, 0.0 }
  0xfc   :  { %v495_v54 = vsel %vm112_vm0, %v493_v52, inf  ;;  %v496_v55 = vsel %vm112_vm0, %v494_v53, inf  ;;  %v500_v14 = vsel %vm112_vm0, %v493_v52, -inf  ;;  %v501_v44 = vsel %vm112_vm0, %v494_v53, -inf }
  0xfd   :  { %v497_v56 = vmin.f32 %v495_v54, %v496_v55  ;;  %v502_v57 = vmax.f32 %v500_v14, %v501_v44 }
  0xff   :  { %498 = vmin.xlane.f32.xlu0 %v497_v56 }
 0x103   :  { %503 = vmax.xlane.f32.xlu0 %v502_v57 }
 0x109   :  { %v271_v58 = vpop.xlane.xlu0 %270 }
 0x10a   :  { %v272_v46 = vmul.f32 0.00390625, %v271_v58 }
 0x10c   :  { %v278_v5 = vmul.f32 %v577_v62, %v272_v46 }
 0x10d   :  { %v322_v4 = vpop.xlane.xlu0 %321 }
 0x10e   :  { %v323_v63 = vmul.f32 0.00390625, %v322_v4  ;;  %v279_v16 = vadd.f32 %v278_v5, %v228_v21 }
 0x110   :  { %v329_v9 = vmul.f32 %v583_v1, %v323_v63 }
 0x111   :  { %v424_v60 = vpop.xlane.xlu0 %423 }
 0x112   :  { %v425_v11 = vmul.f32 0.00390625, %v424_v60  ;;  %v330_v20 = vadd.f32 %v329_v9, %v279_v16 }
 0x114   :  { %v431_v22 = vmul.f32 %v595_v15, %v425_v11 }
 0x115   :  { %v475_v8 = vpop.xlane.xlu0 %474 }
 0x116   :  { %v476_v18 = vmul.f32 0.00390625, %v475_v8 }
 0x118   :  { %v482_v24 = vmul.f32 %v601_v19, %v476_v18 }
 0x127   :  { %v373_v13 = vpop.xlane.xlu1 %372 }
 0x128   :  { %v374_v17 = vmul.f32 0.00390625, %v373_v13 }
 0x12a   :  { %v380_v3 = vmul.f32 %v589_v12, %v374_v17 }
 0x12c   :  { %v381_v23 = vadd.f32 %v380_v3, %v330_v20 }
 0x12e   :  { %v432_v25 = vadd.f32 %v431_v22, %v381_v23 }
 0x130   :  { %v483_v26 = vadd.f32 %v482_v24, %v432_v25 }
 0x132   :  { %492 = vst [vmem:[#allocation9] sm:$0x3] %v483_v26 }
 0x133   :  { %685 = shalt.err (!%p682_p5)
}
 0x134   :  { %533 = dma.vmem_to_hbm [thread:$0]  %s531_s21, 32, %s1017_s6, [#allocation4]  }
 0x135   :  { %s739_s23 = smov [#allocation10]  }
 0x136   :  { %s540_s24 = sshll.u32 %s739_s23, 4  ;;  %s541_s24 = int_to_ptr.vmem [resolvable:$true] %s540_s24 }
 0x137   :  { %s694_s25 = scalar_lea.vmem %s541_s24, 64  ;;  %p699_p7 = scmp.lt.s32.totalorder %s541_s24, %s541_s24 }
 0x138   :  { %p695_p6 = scmp.ne.s32.totalorder %s541_s24, %s694_s25  ;;  %p700_p8 = scmp.lt.s32.totalorder %s694_s25, %s694_s25 }
 0x13a   :  { %p701_p9 = por %p700_p8, %p699_p7 }
 0x13c   :  { %p702_p10 = pnand %p701_p9, %p695_p6 }
 0x188   :  { %v499_v21 = vpop.xlane.xlu0 %498 }
 0x189   :  { %v505_v7 = vsub.f32 %v493_v52, %v499_v21  ;;  %v506_v30 = vsub.f32 %v494_v53, %v499_v21 }
 0x18c   :  { %v504_v27 = vpop.xlane.xlu0 %503 }
 0x18d   :  { %v507_v28 = vsub.f32 %v504_v27, %v499_v21 }
 0x18f   :  { %v508_v29 = vadd.f32 1e-08, %v507_v28 }
 0x191   :  { %628 = vrcp.f32 %v508_v29 }
 0x19e   :  { %v629_v31 = vpop.eup %628 }
 0x19f   :  { %v510_v32 = vmul.f32 %v629_v31, %v505_v7  ;;  %v511_v10 = vmul.f32 %v629_v31, %v506_v30 }
 0x1a1   :  { %v514_v34 = vcombine.low %v510_v32, %v511_v10 }
 0x1a3   :  { %602 = vst.sshfl [vmem:[#allocation10] sm:$0x33 pattern:$0x76325410] %v514_v34 }
 0x1a4   :  { %705 = shalt.err (!%p702_p10)
}
 0x1a5   :  { %543 = dma.vmem_to_hbm [thread:$0]  %s541_s24, 64, %s1018_s7, [#allocation11]  }
 0x1a6   :  { %720 = dma.done.wait [#allocation4], 32  }
 0x1a7   :  { %721 = vsyncadd [#allocation4], 4294967264 }
 0x1a8   :  { %722 = dma.done.wait [#allocation11], 64  }
 0x1a9   :  { %723 = vsyncadd [#allocation11], 4294967232 }
 0x1aa   :  { %550 = vsyncpa [#allocation3], 1 }
 0x1ab   :  { %551 = vsyncpa [#allocation4], 1 }
 0x1ac   :  { %552 = vsyncpa [#allocation11], 1 }
 0x1ad   :  { %553 = vsyncpa [#allocation5], 1 }
 0x1ae   :  { %554 = vsyncpa [#allocation7], 1 }

</bundles_post_ra>
